<compile_context>
chip_gen: v7x
topology: tpu7x:2x2x1
jax: 0.10.0
libtpu: 0.0.40
codegen_flags: <defaults>
</compile_context>

<pallas_src>
import functools

import jax
import jax.numpy as jnp
from jax.experimental import pallas as pl
from jax.experimental.pallas import tpu as pltpu


def _round_up(x, m):
    return ((x + m - 1) // m) * m


def _vmem_capacity_bytes():
    """Physical VMEM per TensorCore; conservative fallback if unqueryable."""
    try:
        cap = getattr(pltpu.get_tpu_info(), "vmem_capacity_bytes", None)
        if cap:
            return int(cap)
    except Exception:
        pass
    return 64 * 1024 * 1024          # v7x-sized conservative default


def dec_kernel(spec_ref, space_ref, w1_ref, w2_ref, b_ref, mu_t_ref, mu_sq_ref,
               q_ref, *, a):
    """Fused encoder-linear + DEC soft assignment for one row tile.

    spec_ref : (TM, S)       spectral features (streamed)
    space_ref: (TM, P)       flattened spatial features (streamed)
    w1_ref   : (S, D_pad)    encoder weight rows for spectral (resident)
    w2_ref   : (P, D_pad)    encoder weight rows for space (resident)
    b_ref    : (1, D_pad)    encoder bias (resident)
    mu_t_ref : (D_pad, K)    cluster centers, pre-transposed (resident)
    mu_sq_ref: (1, K)        ||mu_j||^2 (resident)
    q_ref    : (TM, K)       output soft assignments (real K width)
    """
    # --- fused encoder surrogate: [spectral | space] @ W + b, ReLU ----------
    z = jnp.dot(spec_ref[...], w1_ref[...], preferred_element_type=jnp.float32)
    z = z + jnp.dot(space_ref[...], w2_ref[...],
                    preferred_element_type=jnp.float32)
    z = jnp.maximum(z + b_ref[...], 0.0)                            # (TM, D_pad)

    # --- pairwise squared distances ||z_i - mu_j||^2 (MXU-friendly form) ----
    z_sq = jnp.sum(z * z, axis=1, keepdims=True)                    # (TM, 1)
    cross = jnp.dot(z, mu_t_ref[...],
                    preferred_element_type=jnp.float32)             # (TM, K)
    dist2 = jnp.maximum(z_sq + mu_sq_ref[...] - 2.0 * cross, 0.0)   # (TM, K)

    # --- Student's t soft assignment -----------------------------------------
    if a == 1.0:
        base = 1.0 + dist2
        # EUP approx reciprocal + one Newton-Raphson step (~f32 accuracy,
        # keeps the big elementwise divide off the VALU critical path).
        y = pl.reciprocal(base, approx=True)
        q = y * (2.0 - base * y)
    else:
        base = 1.0 + dist2 * (1.0 / a)
        q = jnp.exp((-(a + 1.0) / 2.0) * jnp.log(base))

    denom = jnp.sum(q, axis=1, keepdims=True)                       # (TM, 1)
    q_ref[...] = (q * pl.reciprocal(denom, approx=False)).astype(q_ref.dtype)


def dec_forward(spectral, space, w_enc, b_enc, cluster_layer, a=1.0, tm=2048):
    """spectral: (N, S)   space: (N, B, B, C)   -> q: (N, K)"""
    n, s = spectral.shape
    spectral = spectral.astype(jnp.float32)
    space2d = space.reshape(n, -1).astype(jnp.float32)               # (N, P)
    p = space2d.shape[1]
    d = w_enc.shape[1]
    k = cluster_layer.shape[0]
    assert w_enc.shape[0] == s + p

    # --- resident parameters (exact zero-padding of the encoder width D) ----
    d_pad = _round_up(d, 128)
    w = w_enc.astype(jnp.float32)
    w1 = jnp.pad(w[:s], ((0, 0), (0, d_pad - d)))                    # (S, D_pad)
    w2 = jnp.pad(w[s:], ((0, 0), (0, d_pad - d)))                    # (P, D_pad)
    b = jnp.pad(b_enc.astype(jnp.float32).reshape(1, d),
                ((0, 0), (0, d_pad - d)))                            # (1, D_pad)
    mu = cluster_layer.astype(jnp.float32)                           # (K, D)
    mu_t = jnp.pad(mu, ((0, 0), (0, d_pad - d))).T                   # (D_pad, K)
    mu_sq = jnp.sum(mu * mu, axis=1)[None, :]                        # (1, K)

    # --- adaptive row tile: fill VMEM, keep >=2 grid steps for v7x megacore -
    vmem_cap = _vmem_capacity_bytes()
    vmem_limit = max(32 << 20, min(int(0.75 * vmem_cap), 96 << 20))
    resident_bytes = 4 * (s * d_pad + p * d_pad + d_pad + d_pad * k + k)
    per_row_bytes = 2 * 4 * (s + p + k)       # double-buffered in + out tiles
    budget = vmem_limit - resident_bytes - (4 << 20)  # headroom for scratch
    tm_cap = max(8, (budget // per_row_bytes) // 8 * 8)
    tm = max(8, min(tm, tm_cap, _round_up(pl.cdiv(n, 2), 8)))
    grid = (pl.cdiv(n, tm),)
    # Partial last tile: OOB rows read undefined data but all math is
    # row-independent, so valid rows are unaffected and OOB writes are masked.

    kernel = functools.partial(dec_kernel, a=float(a))

    q = pl.pallas_call(
        kernel,
        out_shape=jax.ShapeDtypeStruct((n, k), jnp.float32),
        grid_spec=pltpu.PrefetchScalarGridSpec(
            num_scalar_prefetch=0,
            grid=grid,
            in_specs=[
                pl.BlockSpec((tm, s), lambda i: (i, 0)),      # spectral: streamed
                pl.BlockSpec((tm, p), lambda i: (i, 0)),      # space:    streamed
                pl.BlockSpec((s, d_pad), lambda i: (0, 0)),   # w1:       resident
                pl.BlockSpec((p, d_pad), lambda i: (0, 0)),   # w2:       resident
                pl.BlockSpec((1, d_pad), lambda i: (0, 0)),   # bias:     resident
                pl.BlockSpec((d_pad, k), lambda i: (0, 0)),   # mu^T:     resident
                pl.BlockSpec((1, k), lambda i: (0, 0)),       # ||mu||^2: resident
            ],
            out_specs=pl.BlockSpec((tm, k), lambda i: (i, 0)),
        ),
        compiler_params=pltpu.CompilerParams(
            dimension_semantics=("parallel",),
            vmem_limit_bytes=vmem_limit,
        ),
    )(spectral, space2d, w1, w2, b, mu_t, mu_sq)

    return q


def dec_reference(spectral, space, w_enc, b_enc, cluster_layer, a=1.0):
    """Pure-JAX reference matching the PyTorch forward semantics."""
    n = spectral.shape[0]
    feats = jnp.concatenate([spectral.reshape(n, -1), space.reshape(n, -1)], 1)
    z = jnp.maximum(feats @ w_enc + b_enc, 0.0)                      # encoder
    diff = z[:, None, :] - cluster_layer[None, :, :]                 # (N, K, D)
    q = 1.0 + jnp.sum(diff * diff, axis=2) / a
    q = q ** (-(a + 1.0) / 2.0)
    q = q / jnp.sum(q, axis=1, keepdims=True)
    return q


if __name__ == "__main__":
    key = jax.random.PRNGKey(0)
    k1, k2, k3, k4, k5 = jax.random.split(key, 5)

    # small shapes consistent with the module's forward
    num_samples = 8
    spectral_dims = 32
    block = 4
    space_channels = 4
    encoder_out_features = 32
    n_clusters = 8
    a = 1.0

    feat_in = spectral_dims + block * block * space_channels        # 96

    spectral = jax.random.normal(k1, (num_samples, spectral_dims), jnp.float32)
    space = jax.random.normal(
        k2, (num_samples, block, block, space_channels), jnp.float32
    )

    # deterministic synthetic parameters
    w_enc = 0.1 * jax.random.normal(k3, (feat_in, encoder_out_features), jnp.float32)
    b_enc = 0.01 * jax.random.normal(k4, (1, encoder_out_features), jnp.float32)
    cluster_layer = jax.random.normal(
        k5, (n_clusters, encoder_out_features), jnp.float32
    )

    q = dec_forward(spectral, space, w_enc, b_enc, cluster_layer, a=a)
    q = jax.block_until_ready(q)

    q_ref = dec_reference(spectral, space, w_enc, b_enc, cluster_layer, a=a)
    assert q.shape == (num_samples, n_clusters)
    assert bool(jnp.allclose(q, q_ref, atol=1e-5, rtol=1e-5))
    assert bool(jnp.allclose(jnp.sum(q, axis=1), 1.0, atol=1e-5))

    print("KERNEL_OK")
</pallas_src>

<mosaic_0001>
module attributes {stable_mosaic.version = 11 : i64} {
  func.func @dec_kernel(%arg0: i32, %arg1: memref<8x32xf32, #tpu.memory_space<vmem>>, %arg2: memref<8x64xf32, #tpu.memory_space<vmem>>, %arg3: memref<32x128xf32, #tpu.memory_space<vmem>>, %arg4: memref<64x128xf32, #tpu.memory_space<vmem>>, %arg5: memref<1x128xf32, #tpu.memory_space<vmem>>, %arg6: memref<128x8xf32, #tpu.memory_space<vmem>>, %arg7: memref<1x8xf32, #tpu.memory_space<vmem>>, %arg8: memref<8x8xf32, #tpu.memory_space<vmem>>) attributes {dimension_semantics = [#tpu.dimension_semantics<parallel>], iteration_bounds = array<i64: 1>, scalar_prefetch = 0 : i64, scratch_operands = 0 : i64, tpu.core_type = #tpu.core_type<tc>, window_params = [{transform_indices = @transform_0, window_bounds = array<i64: 8, 32>}, {transform_indices = @transform_1, window_bounds = array<i64: 8, 64>}, {pipeline_mode = #tpu.pipeline_mode<synchronous>, transform_indices = @transform_2, window_bounds = array<i64: 32, 128>}, {pipeline_mode = #tpu.pipeline_mode<synchronous>, transform_indices = @transform_3, window_bounds = array<i64: 64, 128>}, {pipeline_mode = #tpu.pipeline_mode<synchronous>, transform_indices = @transform_4, window_bounds = array<i64: 1, 128>}, {pipeline_mode = #tpu.pipeline_mode<synchronous>, transform_indices = @transform_5, window_bounds = array<i64: 128, 8>}, {pipeline_mode = #tpu.pipeline_mode<synchronous>, transform_indices = @transform_6, window_bounds = array<i64: 1, 8>}, {transform_indices = @transform_7, window_bounds = array<i64: 8, 8>}]} {
    %c0 = arith.constant 0 : index
    %c0_0 = arith.constant 0 : index
    %0 = vector.load %arg1[%c0, %c0_0] : memref<8x32xf32, #tpu.memory_space<vmem>>, vector<8x32xf32>
    %c0_1 = arith.constant 0 : index
    %c0_2 = arith.constant 0 : index
    %1 = vector.load %arg3[%c0_1, %c0_2] : memref<32x128xf32, #tpu.memory_space<vmem>>, vector<32x128xf32>
    %cst = arith.constant dense<0.000000e+00> : vector<8x128xf32>
    %2 = tpu.matmul %0, %1, %cst {dimension_numbers = #tpu.dot_dimension_numbers<[1], [0], [0], [1], [0, 0, 1, 1], [], []>} : vector<8x32xf32>, vector<32x128xf32>, vector<8x128xf32> -> vector<8x128xf32>
    %c0_3 = arith.constant 0 : index
    %c0_4 = arith.constant 0 : index
    %3 = vector.load %arg2[%c0_3, %c0_4] : memref<8x64xf32, #tpu.memory_space<vmem>>, vector<8x64xf32>
    %c0_5 = arith.constant 0 : index
    %c0_6 = arith.constant 0 : index
    %4 = vector.load %arg4[%c0_5, %c0_6] : memref<64x128xf32, #tpu.memory_space<vmem>>, vector<64x128xf32>
    %cst_7 = arith.constant dense<0.000000e+00> : vector<8x128xf32>
    %5 = tpu.matmul %3, %4, %cst_7 {dimension_numbers = #tpu.dot_dimension_numbers<[1], [0], [0], [1], [0, 0, 1, 1], [], []>} : vector<8x64xf32>, vector<64x128xf32>, vector<8x128xf32> -> vector<8x128xf32>
    %6 = arith.addf %2, %5 : vector<8x128xf32>
    %c0_8 = arith.constant 0 : index
    %c0_9 = arith.constant 0 : index
    %7 = vector.load %arg5[%c0_8, %c0_9] : memref<1x128xf32, #tpu.memory_space<vmem>>, vector<1x128xf32>
    %8 = vector.broadcast %7 : vector<1x128xf32> to vector<8x128xf32>
    %9 = arith.addf %6, %8 : vector<8x128xf32>
    %cst_10 = arith.constant 0.000000e+00 : f32
    %10 = vector.broadcast %cst_10 : f32 to vector<8x128xf32>
    %11 = arith.maximumf %9, %10 : vector<8x128xf32>
    %12 = arith.mulf %11, %11 : vector<8x128xf32>
    %cst_11 = arith.constant dense<0.000000e+00> : vector<8xf32>
    %13 = vector.multi_reduction <add>, %12, %cst_11 [1] : vector<8x128xf32> to vector<8xf32>
    %14 = vector.shape_cast %13 : vector<8xf32> to vector<8x1xf32>
    %c0_12 = arith.constant 0 : index
    %c0_13 = arith.constant 0 : index
    %15 = vector.load %arg6[%c0_12, %c0_13] : memref<128x8xf32, #tpu.memory_space<vmem>>, vector<128x8xf32>
    %cst_14 = arith.constant dense<0.000000e+00> : vector<8x8xf32>
    %16 = tpu.matmul %11, %15, %cst_14 {dimension_numbers = #tpu.dot_dimension_numbers<[1], [0], [0], [1], [0, 0, 1, 1], [], []>} : vector<8x128xf32>, vector<128x8xf32>, vector<8x8xf32> -> vector<8x8xf32>
    %c0_15 = arith.constant 0 : index
    %c0_16 = arith.constant 0 : index
    %17 = vector.load %arg7[%c0_15, %c0_16] : memref<1x8xf32, #tpu.memory_space<vmem>>, vector<1x8xf32>
    %18 = vector.broadcast %14 : vector<8x1xf32> to vector<8x8xf32>
    %19 = vector.broadcast %17 : vector<1x8xf32> to vector<8x8xf32>
    %20 = arith.addf %18, %19 : vector<8x8xf32>
    %cst_17 = arith.constant 2.000000e+00 : f32
    %21 = vector.broadcast %cst_17 : f32 to vector<8x8xf32>
    %22 = arith.mulf %21, %16 : vector<8x8xf32>
    %23 = arith.subf %20, %22 : vector<8x8xf32>
    %cst_18 = arith.constant 0.000000e+00 : f32
    %24 = vector.broadcast %cst_18 : f32 to vector<8x8xf32>
    %25 = arith.maximumf %23, %24 : vector<8x8xf32>
    %cst_19 = arith.constant 1.000000e+00 : f32
    %26 = vector.broadcast %cst_19 : f32 to vector<8x8xf32>
    %27 = arith.addf %26, %25 : vector<8x8xf32>
    %28 = tpu.reciprocal %27 {approx = true} : vector<8x8xf32> -> vector<8x8xf32>
    %29 = arith.mulf %27, %28 : vector<8x8xf32>
    %cst_20 = arith.constant 2.000000e+00 : f32
    %30 = vector.broadcast %cst_20 : f32 to vector<8x8xf32>
    %31 = arith.subf %30, %29 : vector<8x8xf32>
    %32 = arith.mulf %28, %31 : vector<8x8xf32>
    %cst_21 = arith.constant dense<0.000000e+00> : vector<8xf32>
    %33 = vector.multi_reduction <add>, %32, %cst_21 [1] : vector<8x8xf32> to vector<8xf32>
    %34 = vector.shape_cast %33 : vector<8xf32> to vector<8x1xf32>
    %35 = tpu.reciprocal %34 : vector<8x1xf32> -> vector<8x1xf32>
    %36 = vector.broadcast %35 : vector<8x1xf32> to vector<8x8xf32>
    %37 = arith.mulf %32, %36 : vector<8x8xf32>
    %c0_22 = arith.constant 0 : index
    %c0_23 = arith.constant 0 : index
    %38 = vector.load %arg8[%c0_22, %c0_23] : memref<8x8xf32, #tpu.memory_space<vmem>>, vector<8x8xf32>
    tpu.vector_store %arg8[%c0_22, %c0_23], %37 {strides = array<i32>} : memref<8x8xf32, #tpu.memory_space<vmem>>, vector<8x8xf32>,
    return
  }
  func.func @transform_0(%arg0: i32) -> (i32, i32) {
    %c0_i32 = arith.constant 0 : i32
    %c0_i32_0 = arith.constant 0 : i32
    return %arg0, %c0_i32 : i32, i32
  }
  func.func @transform_1(%arg0: i32) -> (i32, i32) {
    %c0_i32 = arith.constant 0 : i32
    %c0_i32_0 = arith.constant 0 : i32
    return %arg0, %c0_i32 : i32, i32
  }
  func.func @transform_2(%arg0: i32) -> (i32, i32) {
    %c0_i32 = arith.constant 0 : i32
    %c0_i32_0 = arith.constant 0 : i32
    %c0_i32_1 = arith.constant 0 : i32
    return %c0_i32, %c0_i32_0 : i32, i32
  }
  func.func @transform_3(%arg0: i32) -> (i32, i32) {
    %c0_i32 = arith.constant 0 : i32
    %c0_i32_0 = arith.constant 0 : i32
    %c0_i32_1 = arith.constant 0 : i32
    return %c0_i32, %c0_i32_0 : i32, i32
  }
  func.func @transform_4(%arg0: i32) -> (i32, i32) {
    %c0_i32 = arith.constant 0 : i32
    %c0_i32_0 = arith.constant 0 : i32
    %c0_i32_1 = arith.constant 0 : i32
    return %c0_i32, %c0_i32_0 : i32, i32
  }
  func.func @transform_5(%arg0: i32) -> (i32, i32) {
    %c0_i32 = arith.constant 0 : i32
    %c0_i32_0 = arith.constant 0 : i32
    %c0_i32_1 = arith.constant 0 : i32
    return %c0_i32, %c0_i32_0 : i32, i32
  }
  func.func @transform_6(%arg0: i32) -> (i32, i32) {
    %c0_i32 = arith.constant 0 : i32
    %c0_i32_0 = arith.constant 0 : i32
    %c0_i32_1 = arith.constant 0 : i32
    return %c0_i32, %c0_i32_0 : i32, i32
  }
  func.func @transform_7(%arg0: i32) -> (i32, i32) {
    %c0_i32 = arith.constant 0 : i32
    %c0_i32_0 = arith.constant 0 : i32
    return %arg0, %c0_i32 : i32, i32
  }
}

</mosaic_0001>

<bundles_post_ra>
// kernel: tpu_custom_call.1
= control target key start
LH: loop header
LB: loop body
LE: loop exit
PB: predicated region body
PF: predicated region fallthrough
CT: control target
= control target key end

     0   :  { %v498_v3 = vmov 0.0|0.0   ;;  %vm499_vm0 = vmmov 0   ;;  %v500_v6 = vmov 0.0   ;;  %s667_s0 = inlined_call_operand.vmem [shape: f32[8,32], index: 0, kind: input, shape index: {}]   ;;  %s668_s1 = inlined_call_operand.vmem [shape: f32[8,64], index: 1, kind: input, shape index: {}]   ;;  %s669_s2 = inlined_call_operand.vmem [shape: f32[32,128], index: 2, kind: input, shape index: {}]   ;;  %s670_s3 = inlined_call_operand.vmem [shape: f32[64,128], index: 3, kind: input, shape index: {}]   ;;  %s671_s4 = inlined_call_operand.vmem [shape: f32[1,128], index: 4, kind: input, shape index: {}]   ;;  %s672_s5 = inlined_call_operand.vmem [shape: f32[128,8], index: 5, kind: input, shape index: {}]   ;;  %s673_s6 = inlined_call_operand.vmem [shape: f32[1,8], index: 6, kind: input, shape index: {}]   ;;  %s674_s7 = inlined_call_operand.hbm [shape: f32[8,8], index: 7, kind: output, shape index: {}]  }
   0x1   :  { %v33_v0 = vld [vmem:[%s670_s3] sm:$0xff]  ;;  %v34_v1 = vld [vmem:[%s670_s3 + $0x8] sm:$0xff]  ;;  %v35_v2 = vld [vmem:[%s670_s3 + $0x10] sm:$0xff]  ;;  %424 = vmatprep.subr.bf16.mxu0 %v498_v3  ;;  %375 = vmatprep.mubr.msk.f32.mxu0 %vm499_vm0, %v500_v6 }
   0x2   :  { %v425_v4 = vpack.c.bf16 %v34_v1, %v33_v0  ;;  %v36_v5 = vld [vmem:[%s670_s3 + $0x18] sm:$0xff]  ;;  %442 = vmatprep.subr.bf16.mxu1 %v498_v3  ;;  %421 = vmatprep.mubr.msk.f32.mxu1 %vm499_vm0, %v500_v6  ;;  %v37_v8 = vld [vmem:[%s670_s3 + $0x20] sm:$0xff]  ;;  %v38_v9 = vld [vmem:[%s670_s3 + $0x28] sm:$0xff] }
   0x3   :  { %v428_v7 = vpack.c.bf16 %v36_v5, %v35_v2  ;;  %v201_v10 = vld [vmem:[%s672_s5] sm:$0xff]  ;;  %v202_v11 = vld [vmem:[%s672_s5 + $0x8] sm:$0xff]  ;;  %v203_v12 = vld [vmem:[%s672_s5 + $0x10] sm:$0xff]  ;;  %v431_v15 = vpack.c.bf16 %v38_v9, %v37_v8 }
   0x4   :  { %426 = vmatpush3.bf16.msra.mxu0 %v425_v4  ;;  %v204_v13 = vld [vmem:[%s672_s5 + $0x18] sm:$0xff]  ;;  %v443_v14 = vpack.c.bf16 %v202_v11, %v201_v10 }
   0x5   :  { %427 = vmatprep.subr.bf16.mxu0 %v498_v3 }
   0x8   :  { %429 = vmatpush3.bf16.msra.mxu0 %v428_v7 }
   0x9   :  { %12 = vsyncpa [#allocation3], 0  ;;  %430 = vmatprep.subr.bf16.mxu0 %v498_v3  ;;  %v39_v16 = vld [vmem:[%s670_s3 + $0x30] sm:$0xff]  ;;  %v40_v17 = vld [vmem:[%s670_s3 + $0x38] sm:$0xff]  ;;  %444 = vmatpush3.bf16.msra.mxu1 %v443_v14  ;;  %v446_v18 = vpack.c.bf16 %v204_v13, %v203_v12  ;;  %vm41_vm1 = vcmask 523264   ;;  %vm115_vm2 = vcmask 261120  }
   0xa   :  { %445 = vmatprep.subr.bf16.mxu1 %v498_v3  ;;  %v205_v19 = vld [vmem:[%s672_s5 + $0x20] sm:$0xff]  ;;  %v206_v20 = vld [vmem:[%s672_s5 + $0x28] sm:$0xff]  ;;  %v434_v21 = vpack.c.bf16 %v40_v17, %v39_v16  ;;  %v207_v25 = vld [vmem:[%s672_s5 + $0x30] sm:$0xff]  ;;  %vm303_vm3 = vcmask 64512  }
   0xb   :  { %v28_v22 = vld [vmem:[%s669_s2] sm:$0xff]  ;;  %v29_v23 = vld [vmem:[%s669_s2 + $0x8] sm:$0xff]  ;;  %v449_v24 = vpack.c.bf16 %v206_v20, %v205_v19  ;;  %v208_v26 = vld [vmem:[%s672_s5 + $0x38] sm:$0xff] }
   0xc   :  { %432 = vmatpush3.bf16.msra.mxu0 %v431_v15  ;;  %v32_v27 = vld [vmem:[%s668_s1] sm:$0xff]  ;;  %v437_v28 = vpack.c.bf16 %v29_v23, %v28_v22  ;;  %v30_v29 = vld [vmem:[%s669_s2 + $0x10] sm:$0xff]  ;;  %v31_v30 = vld [vmem:[%s669_s2 + $0x18] sm:$0xff]  ;;  %v452_v31 = vpack.c.bf16 %v208_v26, %v207_v25 }
   0xd   :  { %433 = vmatprep.subr.bf16.mxu0 %v498_v3  ;;  %447 = vmatpush3.bf16.msra.mxu1 %v446_v18  ;;  %v440_v32 = vpack.c.bf16 %v31_v30, %v30_v29  ;;  %v27_v33 = vld [vmem:[%s667_s0] sm:$0xff]  ;;  %v210_v35 = vld [vmem:[%s672_s5 + $0x48] sm:$0xff]  ;;  %v211_v37 = vld [vmem:[%s672_s5 + $0x50] sm:$0xff] }
   0xe   :  { %448 = vmatprep.subr.bf16.mxu1 %v498_v3  ;;  %v209_v34 = vld [vmem:[%s672_s5 + $0x40] sm:$0xff]  ;;  %v212_v38 = vld [vmem:[%s672_s5 + $0x58] sm:$0xff]  ;;  %v214_v41 = vld [vmem:[%s672_s5 + $0x68] sm:$0xff] }
   0xf   :  { %v455_v36 = vpack.c.bf16 %v210_v35, %v209_v34  ;;  %v458_v39 = vpack.c.bf16 %v212_v38, %v211_v37  ;;  %v213_v40 = vld [vmem:[%s672_s5 + $0x60] sm:$0xff]  ;;  %v215_v43 = vld [vmem:[%s672_s5 + $0x70] sm:$0xff]  ;;  %v216_v44 = vld [vmem:[%s672_s5 + $0x78] sm:$0xff] }
  0x10   :  { %435 = vmatpush3.bf16.msra.mxu0 %v434_v21  ;;  %v461_v42 = vpack.c.bf16 %v214_v41, %v213_v40  ;;  %v464_v45 = vpack.c.bf16 %v216_v44, %v215_v43  ;;  %v326_v49 = vld [vmem:[%s671_s4] ss:$0 sm:$0xff]  ;;  %s501_s4 = smov [#allocation2]  }
  0x11   :  { %436 = vmatprep.subr.bf16.mxu0 %v498_v3  ;;  %450 = vmatpush3.bf16.msra.mxu1 %v449_v24  ;;  %v327_v55 = vld [vmem:[%s673_s6] ss:$0 sm:$0xff]  ;;  %s316_s5 = sshll.u32 %s501_s4, 4  ;;  %s317_s5 = int_to_ptr.vmem [resolvable:$true] %s316_s5 }
  0x12   :  { %451 = vmatprep.subr.bf16.mxu1 %v498_v3  ;;  %s474_s6 = scalar_lea.vmem %s317_s5, 128  ;;  %p479_p1 = scmp.lt.s32.totalorder %s317_s5, %s317_s5 }
  0x13   :  { %376 = vmatmul.mubr.msk.f32.vlgmr.msra.gmra.mrb[0].mxu0 %vm41_vm1, %v32_v27  ;;  %p475_p0 = scmp.ne.s32.totalorder %s317_s5, %s474_s6  ;;  %p480_p2 = scmp.lt.s32.totalorder %s474_s6, %s474_s6 }
  0x14   :  { %438 = vmatpush3.bf16.msra.mxu0 %v437_v28  ;;  %386 = vmatprep.mubr.msk.f32.mxu0 %vm499_vm0, %v500_v6 }
  0x15   :  { %439 = vmatprep.subr.bf16.mxu0 %v498_v3  ;;  %453 = vmatpush3.bf16.msra.mxu1 %v452_v31  ;;  %p481_p3 = por %p480_p2, %p479_p1 }
  0x16   :  { %454 = vmatprep.subr.bf16.mxu1 %v498_v3 }
  0x17   :  { %p482_p4 = pnand %p481_p3, %p475_p0 }
  0x18   :  { %441 = vmatpush3.bf16.msra.mxu0 %v440_v32 }
  0x19   :  { %456 = vmatpush3.bf16.msra.mxu1 %v455_v36 }
  0x1a   :  { %457 = vmatprep.subr.bf16.mxu1 %v498_v3 }
  0x1b   :  { %387 = vmatmul.mubr.msk.f32.vlgmr.msra.gmra.mrb[2].mxu0 %vm115_vm2, %v27_v33 }
  0x1d   :  { %459 = vmatpush3.bf16.msra.mxu1 %v458_v39 }
  0x1e   :  { %460 = vmatprep.subr.bf16.mxu1 %v498_v3 }
  0x21   :  { %462 = vmatpush3.bf16.msra.mxu1 %v461_v42 }
  0x22   :  { %463 = vmatprep.subr.bf16.mxu1 %v498_v3 }
  0x25   :  { %465 = vmatpush3.bf16.msra.mxu1 %v464_v45 }
  0xe6   :  { %v111_v46 = vpop.f32.mrb[0].mxu0 }
  0xe7   :  { %v377_v47 = vpop.f32.mrb[1].mxu0 }
  0xee   :  { %v185_v48 = vpop.f32.mrb[2].mxu0 }
  0xef   :  { %v186_v50 = vadd.f32 %v185_v48, %v111_v46  ;;  %v388_v51 = vpop.f32.mrb[3].mxu0 }
  0xf1   :  { %v196_v52 = vadd.f32 %v326_v49, %v186_v50 }
  0xf3   :  { %v197_v53 = vmax.f32 %v196_v52, 0.0 }
  0xf5   :  { %422 = vmatmul.mubr.f32.vlgmr.msra.gmra.mrb[0].mxu1 %v197_v53  ;;  %v198_v54 = vmul.f32 %v197_v53, %v197_v53 }
  0xf7   :  { %199 = vadd.xlane.f32.xlu0 %v198_v54 }
 0x184   :  { %v200_v56 = vpop.xlane.xlu0 %199 }
 0x185   :  { %v294_v58 = vadd.f32 %v327_v55, %v200_v56 }
 0x1c8   :  { %v283_v57 = vpop.f32.mrb[0].mxu1 }
 0x1c9   :  { %v295_v59 = vmul.f32 2.0, %v283_v57  ;;  %v423_v60 = vpop.f32.mrb[1].mxu1 }
 0x1cb   :  { %v296_v61 = vsub.f32 %v294_v58, %v295_v59 }
 0x1cd   :  { %v297_v62 = vmax.f32 %v296_v61, 0.0 }
 0x1cf   :  { %v298_v63 = vadd.f32 1.0, %v297_v62 }
 0x1d1   :  { %470 = vrcp.f32 %v298_v63 }
 0x1db   :  { %v471_v0 = vpop.eup %470 }
 0x1dc   :  { %v300_v1 = vmul.f32 %v471_v0, %v298_v63 }
 0x1de   :  { %v301_v2 = vsub.f32 2.0, %v300_v1 }
 0x1e0   :  { %v302_v3 = vmul.f32 %v471_v0, %v301_v2 }
 0x1e2   :  { %v304_v4 = vsel %vm303_vm3, %v302_v3, 0.0 }
 0x1e3   :  { %305 = vadd.xlane.f32.xlu0 %v304_v4 }
 0x270   :  { %v306_v5 = vpop.xlane.xlu0 %305 }
 0x271   :  { %472 = vrcp.f32 %v306_v5 }
 0x27b   :  { %v473_v6 = vpop.eup %472 }
 0x27c   :  { %v308_v7 = vmul.f32 %v473_v6, %v302_v3 }
 0x27e   :  { %309 = vst.msk [vmem:[#allocation2] sm:$0xff] %vm303_vm3, %v308_v7 }
 0x27f   :  { %485 = shalt.err (!%p482_p4)
}
 0x280   :  { %s486_s16 = scalar_lea.hbm %s674_s7, 128 }
 0x281   :  { %p487_p5 = scmp.ne.s32.totalorder %s674_s7, %s486_s16  ;;  %p490_p6 = scmp.lt.u32.totalorder %s486_s16, %s674_s7 }
 0x283   :  { %p492_p7 = pnand %p490_p6, %p487_p5 }
 0x285   :  { %495 = shalt.err (!%p492_p7)
}
 0x286   :  { %319 = dma.vmem_to_hbm [thread:$0]  %s317_s5, 128, %s674_s7, [#allocation3]  }
 0x287   :  { %496 = dma.done.wait [#allocation3], 128  }
 0x288   :  { %497 = vsyncadd [#allocation3], 4294967168 }
 0x289   :  { %323 = vsyncpa [#allocation3], 1 }

</bundles_post_ra>
